<compile_context>
chip_gen: v7x
topology: tpu7x:2x2x1
jax: 0.10.0
libtpu: 0.0.40
codegen_flags: <defaults>
</compile_context>

<pallas_src>
import jax
import jax.numpy as jnp
from jax.experimental import pallas as pl
from jax.experimental.pallas import tpu as pltpu


def _linear_kernel(x_ref, w_ref, o_ref):
    # x_ref: (TM, K) streamed row tile, w_ref: (K, N) resident weight,
    # o_ref: (TM, N). Plain MXU matmul, f32 accumulation.
    o_ref[...] = jnp.dot(
        x_ref[...], w_ref[...], preferred_element_type=jnp.float32
    ).astype(o_ref.dtype)


def _round_up(x, m):
    return ((x + m - 1) // m) * m


def _vmem_capacity_bytes():
    # Generation-aware VMEM capacity; conservative fallback (v7x per-TC size).
    try:
        return int(pltpu.get_tpu_info().vmem_capacity_bytes)
    except Exception:  # pragma: no cover - older jax / non-TPU tracing
        return 64 * 1024 * 1024


def linear_patch_encoder(x_nchw, weight, *, tm_max=2048):
    """Forward pass of LinearPatchEncoder.

    Args:
      x_nchw: (B, C, H, W) input (NCHW, like PyTorch). f32 or bf16.
      weight: (emb_size, input_size) weight, PyTorch nn.Linear layout.
      tm_max: max row-tile size (rows per grid step).

    Returns:
      (B, emb_size) array in the input dtype.
    """
    B = x_nchw.shape[0]
    K = x_nchw.shape[1] * x_nchw.shape[2] * x_nchw.shape[3]  # input_size
    N = weight.shape[0]                                      # emb_size
    assert weight.shape[1] == K, "weight/input size mismatch"

    # Glue: flatten(start_dim=1). One-time tiny transpose of the weight to
    # (K, N) so the kernel contracts with no in-kernel rhs transpose.
    x_flat = jnp.reshape(x_nchw, (B, K))
    w_kn = jnp.transpose(weight)  # (K, N)

    out_dtype = x_flat.dtype

    # Row tile: multiple of 8 sublanes (16 for packed bf16). No padding of x:
    # the partial last block (if any) is handled/masked by Pallas, and rows
    # past B are never written back.
    sub = 16 if x_flat.dtype == jnp.bfloat16 else 8
    TM = min(_round_up(tm_max, sub), _round_up(B, sub))
    grid = (pl.cdiv(B, TM),)

    # VMEM budget: double-buffered x/out tiles + (double-buffered) resident
    # weight, with 2x headroom; clamped to 75% of this generation's VMEM.
    x_bytes = jnp.dtype(x_flat.dtype).itemsize
    w_bytes = jnp.dtype(w_kn.dtype).itemsize
    o_bytes = jnp.dtype(out_dtype).itemsize
    needed = 2 * (TM * K * x_bytes + K * N * w_bytes + TM * N * o_bytes)
    vmem_limit = int(
        min(max(2 * needed, 16 * 1024 * 1024), int(0.75 * _vmem_capacity_bytes()))
    )

    cost = pl.CostEstimate(
        flops=2 * B * K * N,
        transcendentals=0,
        bytes_accessed=B * K * x_bytes + K * N * w_bytes + B * N * o_bytes,
    )

    return pl.pallas_call(
        _linear_kernel,
        out_shape=jax.ShapeDtypeStruct((B, N), out_dtype),
        grid=grid,
        in_specs=[
            pl.BlockSpec((TM, K), lambda i: (i, 0)),  # streamed row tiles
            pl.BlockSpec((K, N), lambda i: (0, 0)),   # resident weight (K, N)
        ],
        out_specs=pl.BlockSpec((TM, N), lambda i: (i, 0)),
        compiler_params=pltpu.CompilerParams(
            dimension_semantics=("parallel",),
            vmem_limit_bytes=vmem_limit,
        ),
        cost_estimate=cost,
    )(x_flat, w_kn)


if __name__ == "__main__":
    # Small shapes consistent with the module: patches of shape (C, H, W)
    # flattened into input_size = C*H*W, projected to emb_size.
    B, C, H, W = 2, 4, 16, 16
    input_size = C * H * W          # 1024
    emb_size = 32

    key = jax.random.PRNGKey(0)
    kx, kw = jax.random.split(key)
    x = jax.random.normal(kx, (B, C, H, W), dtype=jnp.float32)
    # Deterministic synthetic weight in PyTorch nn.Linear layout (out, in).
    weight = jax.random.normal(kw, (emb_size, input_size), dtype=jnp.float32) * 0.02

    y = linear_patch_encoder(x, weight)
    y = jax.block_until_ready(y)

    # Reference check in plain JAX (flatten + matmul with W^T).
    y_ref = jnp.reshape(x, (B, input_size)) @ weight.T
    assert y.shape == (B, emb_size)
    assert jnp.allclose(y, y_ref, atol=1e-4, rtol=1e-4)

    print("KERNEL_OK")
</pallas_src>

<mosaic_0001>
module attributes {stable_mosaic.version = 11 : i64} {
  func.func @_linear_kernel(%arg0: i32, %arg1: memref<8x1024xf32, #tpu.memory_space<vmem>>, %arg2: memref<1024x32xf32, #tpu.memory_space<vmem>>, %arg3: memref<8x32xf32, #tpu.memory_space<vmem>>) attributes {dimension_semantics = [#tpu.dimension_semantics<parallel>], iteration_bounds = array<i64: 1>, scalar_prefetch = 0 : i64, scratch_operands = 0 : i64, tpu.core_type = #tpu.core_type<tc>, window_params = [{transform_indices = @transform_0, window_bounds = array<i64: 8, 1024>}, {pipeline_mode = #tpu.pipeline_mode<synchronous>, transform_indices = @transform_1, window_bounds = array<i64: 1024, 32>}, {transform_indices = @transform_2, window_bounds = array<i64: 8, 32>}]} {
    %c0 = arith.constant 0 : index
    %c0_0 = arith.constant 0 : index
    %0 = vector.load %arg1[%c0, %c0_0] : memref<8x1024xf32, #tpu.memory_space<vmem>>, vector<8x1024xf32>
    %c0_1 = arith.constant 0 : index
    %c0_2 = arith.constant 0 : index
    %1 = vector.load %arg2[%c0_1, %c0_2] : memref<1024x32xf32, #tpu.memory_space<vmem>>, vector<1024x32xf32>
    %cst = arith.constant dense<0.000000e+00> : vector<8x32xf32>
    %2 = tpu.matmul %0, %1, %cst {dimension_numbers = #tpu.dot_dimension_numbers<[1], [0], [0], [1], [0, 0, 1, 1], [], []>} : vector<8x1024xf32>, vector<1024x32xf32>, vector<8x32xf32> -> vector<8x32xf32>
    %c0_3 = arith.constant 0 : index
    %c0_4 = arith.constant 0 : index
    %3 = vector.load %arg3[%c0_3, %c0_4] : memref<8x32xf32, #tpu.memory_space<vmem>>, vector<8x32xf32>
    tpu.vector_store %arg3[%c0_3, %c0_4], %2 {strides = array<i32>} : memref<8x32xf32, #tpu.memory_space<vmem>>, vector<8x32xf32>,
    return
  }
  func.func @transform_0(%arg0: i32) -> (i32, i32) {
    %c0_i32 = arith.constant 0 : i32
    %c0_i32_0 = arith.constant 0 : i32
    return %arg0, %c0_i32 : i32, i32
  }
  func.func @transform_1(%arg0: i32) -> (i32, i32) {
    %c0_i32 = arith.constant 0 : i32
    %c0_i32_0 = arith.constant 0 : i32
    %c0_i32_1 = arith.constant 0 : i32
    return %c0_i32, %c0_i32_0 : i32, i32
  }
  func.func @transform_2(%arg0: i32) -> (i32, i32) {
    %c0_i32 = arith.constant 0 : i32
    %c0_i32_0 = arith.constant 0 : i32
    return %arg0, %c0_i32 : i32, i32
  }
}

</mosaic_0001>

<bundles_post_ra>
// kernel: tpu_custom_call.1
= control target key start
LH: loop header
LB: loop body
LE: loop exit
PB: predicated region body
PF: predicated region fallthrough
CT: control target
= control target key end

     0   :  { %7 = vsyncpa [#allocation3], 0  ;;  %v842_v54 = vmov 1983009808   ;;  %v163_v56 = vlaneseq  ;;  %vm516_vm0 = vcmask 261120   ;;  %s1291_s0 = inlined_call_operand.vmem [shape: f32[2,1024], index: 0, kind: input, shape index: {}]   ;;  %s1292_s1 = inlined_call_operand.vmem [shape: f32[1024,32], index: 1, kind: input, shape index: {}]   ;;  %s1293_s2 = inlined_call_operand.hbm [shape: f32[2,32], index: 2, kind: output, shape index: {}]  }
   0x1   :  { %v36_v0 = vld [vmem:[%s1292_s1 + $0x80] sm:$0xff]  ;;  %v37_v1 = vld [vmem:[%s1292_s1 + $0x88] sm:$0xff]  ;;  %v38_v12 = vld [vmem:[%s1292_s1 + $0x90] sm:$0xff]  ;;  %v161_v55 = vunpack.c.l.s4 %v842_v54 }
   0x2   :  { %v674_v2 = vpack.c.bf16 %v37_v1, %v36_v0  ;;  %v68_v3 = vld [vmem:[%s1292_s1 + $0x180] sm:$0xff]  ;;  %v69_v4 = vld [vmem:[%s1292_s1 + $0x188] sm:$0xff]  ;;  %v39_v13 = vld [vmem:[%s1292_s1 + $0x98] sm:$0xff] }
   0x3   :  { %v20_v5 = vld [vmem:[%s1292_s1] sm:$0xff]  ;;  %v706_v6 = vpack.c.bf16 %v69_v4, %v68_v3  ;;  %v21_v7 = vld [vmem:[%s1292_s1 + $0x8] sm:$0xff]  ;;  %v70_v14 = vld [vmem:[%s1292_s1 + $0x190] sm:$0xff]  ;;  %v678_v15 = vpack.c.bf16 %v39_v13, %v38_v12 }
   0x4   :  { %v52_v8 = vld [vmem:[%s1292_s1 + $0x100] sm:$0xff]  ;;  %v53_v9 = vld [vmem:[%s1292_s1 + $0x108] sm:$0xff]  ;;  %675 = vmatprep.subr.bf16.mxu0 %v674_v2  ;;  %v676_v10 = vpack.c.bf16 %v21_v7, %v20_v5  ;;  %v71_v16 = vld [vmem:[%s1292_s1 + $0x198] sm:$0xff]  ;;  %v164_v7 = vshrl.u32 %v163_v56, 7 }
   0x5   :  { %v708_v11 = vpack.c.bf16 %v53_v9, %v52_v8  ;;  %707 = vmatprep.subr.bf16.mxu1 %v706_v6  ;;  %v22_v17 = vld [vmem:[%s1292_s1 + $0x10] sm:$0xff]  ;;  %v23_v18 = vld [vmem:[%s1292_s1 + $0x18] sm:$0xff]  ;;  %v710_v19 = vpack.c.bf16 %v71_v16, %v70_v14  ;;  %v40_v23 = vld [vmem:[%s1292_s1 + $0xa0] sm:$0xff]  ;;  %v162_v6 = vunpack.c.0.s8 %v161_v55 }
   0x6   :  { %677 = vmatpush3.bf16.msra.mxu0 %v676_v10  ;;  %v680_v20 = vpack.c.bf16 %v23_v18, %v22_v17  ;;  %v54_v21 = vld [vmem:[%s1292_s1 + $0x110] sm:$0xff]  ;;  %v55_v22 = vld [vmem:[%s1292_s1 + $0x118] sm:$0xff]  ;;  %v41_v25 = vld [vmem:[%s1292_s1 + $0xa8] sm:$0xff] }
   0x7   :  { %709 = vmatpush3.bf16.msra.mxu1 %v708_v11  ;;  %679 = vmatprep.subr.bf16.mxu0 %v678_v15  ;;  %v712_v24 = vpack.c.bf16 %v55_v22, %v54_v21  ;;  %v72_v26 = vld [vmem:[%s1292_s1 + $0x1a0] sm:$0xff]  ;;  %v73_v27 = vld [vmem:[%s1292_s1 + $0x1a8] sm:$0xff]  ;;  %v682_v28 = vpack.c.bf16 %v41_v25, %v40_v23  ;;  %v42_v34 = vld [vmem:[%s1292_s1 + $0xb0] sm:$0xff]  ;;  %v1041_v25 = vsub.s32 %v162_v6, %v164_v7 }
   0x8   :  { %711 = vmatprep.subr.bf16.mxu1 %v710_v19  ;;  %v714_v29 = vpack.c.bf16 %v73_v27, %v72_v26  ;;  %v24_v30 = vld [vmem:[%s1292_s1 + $0x20] sm:$0xff]  ;;  %v25_v31 = vld [vmem:[%s1292_s1 + $0x28] sm:$0xff]  ;;  %v43_v35 = vld [vmem:[%s1292_s1 + $0xb8] sm:$0xff] }
   0x9   :  { %v56_v32 = vld [vmem:[%s1292_s1 + $0x120] sm:$0xff]  ;;  %v57_v33 = vld [vmem:[%s1292_s1 + $0x128] sm:$0xff]  ;;  %v684_v36 = vpack.c.bf16 %v25_v31, %v24_v30  ;;  %v74_v38 = vld [vmem:[%s1292_s1 + $0x1b0] sm:$0xff]  ;;  %v686_v41 = vpack.c.bf16 %v43_v35, %v42_v34 }
   0xa   :  { %681 = vmatpush3.bf16.msra.mxu0 %v680_v20  ;;  %v716_v37 = vpack.c.bf16 %v57_v33, %v56_v32  ;;  %v75_v39 = vld [vmem:[%s1292_s1 + $0x1b8] sm:$0xff]  ;;  %v26_v40 = vld [vmem:[%s1292_s1 + $0x30] sm:$0xff]  ;;  %v44_v46 = vld [vmem:[%s1292_s1 + $0xc0] sm:$0xff] }
   0xb   :  { %713 = vmatpush3.bf16.msra.mxu1 %v712_v24  ;;  %683 = vmatprep.subr.bf16.mxu0 %v682_v28  ;;  %v718_v42 = vpack.c.bf16 %v75_v39, %v74_v38  ;;  %v27_v43 = vld [vmem:[%s1292_s1 + $0x38] sm:$0xff]  ;;  %v58_v44 = vld [vmem:[%s1292_s1 + $0x130] sm:$0xff]  ;;  %v45_v47 = vld [vmem:[%s1292_s1 + $0xc8] sm:$0xff] }
   0xc   :  { %715 = vmatprep.subr.bf16.mxu1 %v714_v29  ;;  %v59_v45 = vld [vmem:[%s1292_s1 + $0x138] sm:$0xff]  ;;  %v76_v48 = vld [vmem:[%s1292_s1 + $0x1c0] sm:$0xff]  ;;  %v77_v49 = vld [vmem:[%s1292_s1 + $0x1c8] sm:$0xff]  ;;  %v688_v50 = vpack.c.bf16 %v27_v43, %v26_v40  ;;  %v690_v57 = vpack.c.bf16 %v45_v47, %v44_v46 }
   0xd   :  { %v720_v51 = vpack.c.bf16 %v59_v45, %v58_v44  ;;  %v28_v52 = vld [vmem:[%s1292_s1 + $0x40] sm:$0xff]  ;;  %v29_v53 = vld [vmem:[%s1292_s1 + $0x48] sm:$0xff]  ;;  %v722_v58 = vpack.c.bf16 %v77_v49, %v76_v48  ;;  %v46_v61 = vld [vmem:[%s1292_s1 + $0xd0] sm:$0xff] }
   0xe   :  { %685 = vmatpush3.bf16.msra.mxu0 %v684_v36  ;;  %v60_v59 = vld [vmem:[%s1292_s1 + $0x140] sm:$0xff]  ;;  %v61_v60 = vld [vmem:[%s1292_s1 + $0x148] sm:$0xff]  ;;  %v47_v62 = vld [vmem:[%s1292_s1 + $0xd8] sm:$0xff]  ;;  %v692_v1 = vpack.c.bf16 %v29_v53, %v28_v52 }
   0xf   :  { %717 = vmatpush3.bf16.msra.mxu1 %v716_v37  ;;  %687 = vmatprep.subr.bf16.mxu0 %v686_v41  ;;  %v78_v63 = vld [vmem:[%s1292_s1 + $0x1d0] sm:$0xff]  ;;  %v79_v0 = vld [vmem:[%s1292_s1 + $0x1d8] sm:$0xff]  ;;  %v724_v2 = vpack.c.bf16 %v61_v60, %v60_v59  ;;  %v694_v8 = vpack.c.bf16 %v47_v62, %v46_v61  ;;  %v48_v11 = vld [vmem:[%s1292_s1 + $0xe0] sm:$0xff] }
  0x10   :  { %719 = vmatprep.subr.bf16.mxu1 %v718_v42  ;;  %v30_v3 = vld [vmem:[%s1292_s1 + $0x50] sm:$0xff]  ;;  %v31_v4 = vld [vmem:[%s1292_s1 + $0x58] sm:$0xff]  ;;  %v726_v9 = vpack.c.bf16 %v79_v0, %v78_v63  ;;  %v49_v12 = vld [vmem:[%s1292_s1 + $0xe8] sm:$0xff] }
  0x11   :  { %v62_v5 = vld [vmem:[%s1292_s1 + $0x150] sm:$0xff]  ;;  %v63_v10 = vld [vmem:[%s1292_s1 + $0x158] sm:$0xff]  ;;  %v80_v13 = vld [vmem:[%s1292_s1 + $0x1e0] sm:$0xff]  ;;  %v696_v19 = vpack.c.bf16 %v31_v4, %v30_v3  ;;  %v698_v26 = vpack.c.bf16 %v49_v12, %v48_v11 }
  0x12   :  { %689 = vmatpush3.bf16.msra.mxu0 %v688_v50  ;;  %v81_v14 = vld [vmem:[%s1292_s1 + $0x1e8] sm:$0xff]  ;;  %v32_v15 = vld [vmem:[%s1292_s1 + $0x60] sm:$0xff]  ;;  %v728_v20 = vpack.c.bf16 %v63_v10, %v62_v5  ;;  %v50_v21 = vld [vmem:[%s1292_s1 + $0xf0] sm:$0xff] }
  0x13   :  { %721 = vmatpush3.bf16.msra.mxu1 %v720_v51  ;;  %691 = vmatprep.subr.bf16.mxu0 %v690_v57  ;;  %v33_v16 = vld [vmem:[%s1292_s1 + $0x68] sm:$0xff]  ;;  %v64_v17 = vld [vmem:[%s1292_s1 + $0x160] sm:$0xff]  ;;  %v51_v22 = vld [vmem:[%s1292_s1 + $0xf8] sm:$0xff]  ;;  %v730_v27 = vpack.c.bf16 %v81_v14, %v80_v13 }
  0x14   :  { %723 = vmatprep.subr.bf16.mxu1 %v722_v58  ;;  %v65_v18 = vld [vmem:[%s1292_s1 + $0x168] sm:$0xff]  ;;  %v82_v23 = vld [vmem:[%s1292_s1 + $0x1f0] sm:$0xff]  ;;  %v83_v24 = vld [vmem:[%s1292_s1 + $0x1f8] sm:$0xff]  ;;  %v700_v31 = vpack.c.bf16 %v33_v16, %v32_v15  ;;  %v702_v39 = vpack.c.bf16 %v51_v22, %v50_v21 }
  0x15   :  { %v806_v28 = vld [vmem:[%s1291_s0] ss:$16 sps:$4 sm:$0xff]   ;;  %v810_v30 = vld [vmem:[%s1291_s0 + $0x4] ss:$16 sps:$4 sm:$0xff]   ;;  %v732_v32 = vpack.c.bf16 %v65_v18, %v64_v17  ;;  %v35_v35 = vld [vmem:[%s1292_s1 + $0x78] sm:$0xff]  ;;  %v734_v40 = vpack.c.bf16 %v83_v24, %v82_v23 }
  0x16   :  { %693 = vmatpush3.bf16.msra.mxu0 %v692_v1  ;;  %v808_v29 = vld [vmem:[%s1291_s0 + $0x20] ss:$16 sps:$4 sm:$0xff]   ;;  %v811_v33 = vld [vmem:[%s1291_s0 + $0x24] ss:$16 sps:$4 sm:$0xff]   ;;  %v166_v36 = vrot.slane %v806_v28, %v1041_v25  ;;  %v173_v38 = vrot.slane %v810_v30, %v1041_v25  ;;  %v67_v42 = vld [vmem:[%s1292_s1 + $0x178] sm:$0xff] }
  0x17   :  { %725 = vmatpush3.bf16.msra.mxu1 %v724_v2  ;;  %695 = vmatprep.subr.bf16.mxu0 %v694_v8  ;;  %v34_v34 = vld [vmem:[%s1292_s1 + $0x70] sm:$0xff]  ;;  %v180_v37 = vrot.slane %v808_v29, %v1041_v25  ;;  %v187_v43 = vrot.slane %v811_v33, %v1041_v25  ;;  %v100_v44 = vld [vmem:[%s1292_s1 + $0x280] sm:$0xff]  ;;  %v101_v46 = vld [vmem:[%s1292_s1 + $0x288] sm:$0xff] }
  0x18   :  { %727 = vmatprep.subr.bf16.mxu1 %v726_v9  ;;  %v66_v41 = vld [vmem:[%s1292_s1 + $0x170] sm:$0xff]  ;;  %v132_v47 = vld [vmem:[%s1292_s1 + $0x380] sm:$0xff]  ;;  %v133_v48 = vld [vmem:[%s1292_s1 + $0x388] sm:$0xff]  ;;  %v704_v50 = vpack.c.bf16 %v35_v35, %v34_v34  ;;  %v738_v54 = vpack.c.bf16 %v101_v46, %v100_v44 }
  0x19   :  { %v189_v45 = vcombine.high %v166_v36, %v180_v37  ;;  %v191_v49 = vcombine.high %v173_v38, %v187_v43  ;;  %v736_v51 = vpack.c.bf16 %v67_v42, %v66_v41  ;;  %v84_v52 = vld [vmem:[%s1292_s1 + $0x200] sm:$0xff]  ;;  %v85_v53 = vld [vmem:[%s1292_s1 + $0x208] sm:$0xff]  ;;  %v770_v55 = vpack.c.bf16 %v133_v48, %v132_v47  ;;  %v102_v58 = vld [vmem:[%s1292_s1 + $0x290] sm:$0xff] }
  0x1a   :  { %697 = vmatpush3.bf16.msra.mxu0 %v696_v19  ;;  %v116_v56 = vld [vmem:[%s1292_s1 + $0x300] sm:$0xff]  ;;  %v117_v57 = vld [vmem:[%s1292_s1 + $0x308] sm:$0xff]  ;;  %v103_v59 = vld [vmem:[%s1292_s1 + $0x298] sm:$0xff]  ;;  %v188_v62 = vcombine.low %v166_v36, %v180_v37  ;;  %v190_v63 = vcombine.low %v173_v38, %v187_v43  ;;  %v740_v0 = vpack.c.bf16 %v85_v53, %v84_v52 }
  0x1b   :  { %729 = vmatpush3.bf16.msra.mxu1 %v728_v20  ;;  %699 = vmatprep.subr.bf16.mxu0 %v698_v26  ;;  %v134_v60 = vld [vmem:[%s1292_s1 + $0x390] sm:$0xff]  ;;  %v135_v61 = vld [vmem:[%s1292_s1 + $0x398] sm:$0xff]  ;;  %v772_v1 = vpack.c.bf16 %v117_v57, %v116_v56  ;;  %v742_v4 = vpack.c.bf16 %v103_v59, %v102_v58  ;;  %v104_v8 = vld [vmem:[%s1292_s1 + $0x2a0] sm:$0xff] }
  0x1c   :  { %731 = vmatprep.subr.bf16.mxu1 %v730_v27  ;;  %300 = vmatprep.mubr.f32.mxu0 %v189_v45  ;;  %v86_v2 = vld [vmem:[%s1292_s1 + $0x210] sm:$0xff]  ;;  %v87_v3 = vld [vmem:[%s1292_s1 + $0x218] sm:$0xff]  ;;  %v774_v5 = vpack.c.bf16 %v135_v61, %v134_v60  ;;  %v105_v9 = vld [vmem:[%s1292_s1 + $0x2a8] sm:$0xff] }
  0x1d   :  { %370 = vmatprep.mubr.f32.mxu1 %v191_v49  ;;  %v118_v6 = vld [vmem:[%s1292_s1 + $0x310] sm:$0xff]  ;;  %v119_v7 = vld [vmem:[%s1292_s1 + $0x318] sm:$0xff]  ;;  %v136_v10 = vld [vmem:[%s1292_s1 + $0x3a0] sm:$0xff]  ;;  %v744_v12 = vpack.c.bf16 %v87_v3, %v86_v2  ;;  %v746_v16 = vpack.c.bf16 %v105_v9, %v104_v8 }
  0x1e   :  { %701 = vmatpush3.bf16.msra.mxu0 %v700_v31  ;;  %v137_v11 = vld [vmem:[%s1292_s1 + $0x3a8] sm:$0xff]  ;;  %v776_v13 = vpack.c.bf16 %v119_v7, %v118_v6  ;;  %v88_v14 = vld [vmem:[%s1292_s1 + $0x220] sm:$0xff]  ;;  %v106_v20 = vld [vmem:[%s1292_s1 + $0x2b0] sm:$0xff] }
  0x1f   :  { %733 = vmatpush3.bf16.msra.mxu1 %v732_v32  ;;  %703 = vmatprep.subr.bf16.mxu0 %v702_v39  ;;  %v89_v15 = vld [vmem:[%s1292_s1 + $0x228] sm:$0xff]  ;;  %v778_v17 = vpack.c.bf16 %v137_v11, %v136_v10  ;;  %v120_v18 = vld [vmem:[%s1292_s1 + $0x320] sm:$0xff]  ;;  %v107_v21 = vld [vmem:[%s1292_s1 + $0x2b8] sm:$0xff] }
  0x20   :  { %735 = vmatprep.subr.bf16.mxu1 %v734_v40  ;;  %v121_v19 = vld [vmem:[%s1292_s1 + $0x328] sm:$0xff]  ;;  %v138_v22 = vld [vmem:[%s1292_s1 + $0x3b0] sm:$0xff]  ;;  %v139_v23 = vld [vmem:[%s1292_s1 + $0x3b8] sm:$0xff]  ;;  %v748_v24 = vpack.c.bf16 %v89_v15, %v88_v14  ;;  %v750_v30 = vpack.c.bf16 %v107_v21, %v106_v20 }
  0x21   :  { %v780_v26 = vpack.c.bf16 %v121_v19, %v120_v18  ;;  %v90_v27 = vld [vmem:[%s1292_s1 + $0x230] sm:$0xff]  ;;  %v91_v28 = vld [vmem:[%s1292_s1 + $0x238] sm:$0xff]  ;;  %v782_v31 = vpack.c.bf16 %v139_v23, %v138_v22  ;;  %v108_v33 = vld [vmem:[%s1292_s1 + $0x2c0] sm:$0xff] }
  0x22   :  { %705 = vmatpush3.bf16.msra.mxu0 %v704_v50  ;;  %v122_v29 = vld [vmem:[%s1292_s1 + $0x330] sm:$0xff]  ;;  %v123_v32 = vld [vmem:[%s1292_s1 + $0x338] sm:$0xff]  ;;  %v109_v34 = vld [vmem:[%s1292_s1 + $0x2c8] sm:$0xff]  ;;  %v752_v41 = vpack.c.bf16 %v91_v28, %v90_v27 }
  0x23   :  { %737 = vmatpush3.bf16.msra.mxu1 %v736_v51  ;;  %739 = vmatprep.subr.bf16.mxu0 %v738_v54  ;;  %v92_v35 = vld [vmem:[%s1292_s1 + $0x240] sm:$0xff]  ;;  %v141_v37 = vld [vmem:[%s1292_s1 + $0x3c8] sm:$0xff]  ;;  %v784_v42 = vpack.c.bf16 %v123_v32, %v122_v29  ;;  %v110_v43 = vld [vmem:[%s1292_s1 + $0x2d0] sm:$0xff]  ;;  %v754_v47 = vpack.c.bf16 %v109_v34, %v108_v33 }
  0x24   :  { %771 = vmatprep.subr.bf16.mxu1 %v770_v55  ;;  %v140_v36 = vld [vmem:[%s1292_s1 + $0x3c0] sm:$0xff]  ;;  %v93_v38 = vld [vmem:[%s1292_s1 + $0x248] sm:$0xff]  ;;  %v111_v44 = vld [vmem:[%s1292_s1 + $0x2d8] sm:$0xff] }
  0x25   :  { %301 = vmatmul.mubr.f32.vlgmr.msra.gmra.mrb[0].mxu0 %v188_v62  ;;  %v124_v39 = vld [vmem:[%s1292_s1 + $0x340] sm:$0xff]  ;;  %v125_v40 = vld [vmem:[%s1292_s1 + $0x348] sm:$0xff]  ;;  %v142_v45 = vld [vmem:[%s1292_s1 + $0x3d0] sm:$0xff]  ;;  %v786_v48 = vpack.c.bf16 %v141_v37, %v140_v36  ;;  %v756_v52 = vpack.c.bf16 %v93_v38, %v92_v35  ;;  %v758_v60 = vpack.c.bf16 %v111_v44, %v110_v43 }
  0x26   :  { %371 = vmatmul.mubr.f32.vlgmr.msra.gmra.mrb[0].mxu1 %v190_v63  ;;  %741 = vmatpush3.bf16.msra.mxu0 %v740_v0  ;;  %v143_v46 = vld [vmem:[%s1292_s1 + $0x3d8] sm:$0xff]  ;;  %v788_v53 = vpack.c.bf16 %v125_v40, %v124_v39  ;;  %v94_v55 = vld [vmem:[%s1292_s1 + $0x250] sm:$0xff]  ;;  %v112_v0 = vld [vmem:[%s1292_s1 + $0x2e0] sm:$0xff] }
  0x27   :  { %773 = vmatpush3.bf16.msra.mxu1 %v772_v1  ;;  %743 = vmatprep.subr.bf16.mxu0 %v742_v4  ;;  %v812_v49 = vld [vmem:[%s1291_s0 + $0x8] ss:$16 sps:$4 sm:$0xff]   ;;  %v816_v51 = vld [vmem:[%s1291_s0 + $0xc] ss:$16 sps:$4 sm:$0xff]   ;;  %v790_v61 = vpack.c.bf16 %v143_v46, %v142_v45  ;;  %v126_v62 = vld [vmem:[%s1292_s1 + $0x350] sm:$0xff] }
  0x28   :  { %775 = vmatprep.subr.bf16.mxu1 %v774_v5  ;;  %v814_v50 = vld [vmem:[%s1291_s0 + $0x28] ss:$16 sps:$4 sm:$0xff]   ;;  %v817_v54 = vld [vmem:[%s1291_s0 + $0x2c] ss:$16 sps:$4 sm:$0xff]   ;;  %v202_v57 = vrot.slane %v812_v49, %v1041_v25  ;;  %v209_v59 = vrot.slane %v816_v51, %v1041_v25  ;;  %v144_v3 = vld [vmem:[%s1292_s1 + $0x3e0] sm:$0xff] }
  0x29   :  { %v95_v56 = vld [vmem:[%s1292_s1 + $0x258] sm:$0xff]  ;;  %v216_v58 = vrot.slane %v814_v50, %v1041_v25  ;;  %v223_v1 = vrot.slane %v817_v54, %v1041_v25  ;;  %v113_v2 = vld [vmem:[%s1292_s1 + $0x2e8] sm:$0xff]  ;;  %v96_v25 = vld [vmem:[%s1292_s1 + $0x260] sm:$0xff] }
  0x2a   :  { %745 = vmatpush3.bf16.msra.mxu0 %v744_v12  ;;  %v127_v63 = vld [vmem:[%s1292_s1 + $0x358] sm:$0xff]  ;;  %v145_v4 = vld [vmem:[%s1292_s1 + $0x3e8] sm:$0xff]  ;;  %v760_v7 = vpack.c.bf16 %v95_v56, %v94_v55  ;;  %v762_v10 = vpack.c.bf16 %v113_v2, %v112_v0  ;;  %v128_v12 = vld [vmem:[%s1292_s1 + $0x360] sm:$0xff] }
  0x2b   :  { %777 = vmatpush3.bf16.msra.mxu1 %v776_v13  ;;  %747 = vmatprep.subr.bf16.mxu0 %v746_v16  ;;  %v225_v5 = vcombine.high %v202_v57, %v216_v58  ;;  %v227_v6 = vcombine.high %v209_v59, %v223_v1  ;;  %v792_v8 = vpack.c.bf16 %v127_v63, %v126_v62  ;;  %v97_v9 = vld [vmem:[%s1292_s1 + $0x268] sm:$0xff]  ;;  %v114_v14 = vld [vmem:[%s1292_s1 + $0x2f0] sm:$0xff]  ;;  %v115_v15 = vld [vmem:[%s1292_s1 + $0x2f8] sm:$0xff] }
  0x2c   :  { %779 = vmatprep.subr.bf16.mxu1 %v778_v17  ;;  %v794_v11 = vpack.c.bf16 %v145_v4, %v144_v3  ;;  %v129_v13 = vld [vmem:[%s1292_s1 + $0x368] sm:$0xff]  ;;  %v146_v16 = vld [vmem:[%s1292_s1 + $0x3f0] sm:$0xff]  ;;  %v147_v17 = vld [vmem:[%s1292_s1 + $0x3f8] sm:$0xff]  ;;  %v764_v18 = vpack.c.bf16 %v97_v9, %v96_v25  ;;  %v766_v21 = vpack.c.bf16 %v115_v15, %v114_v14  ;;  %v224_v29 = vcombine.low %v202_v57, %v216_v58 }
  0x2d   :  { %440 = vmatprep.mubr.f32.mxu0 %v225_v5  ;;  %510 = vmatprep.mubr.f32.mxu1 %v227_v6  ;;  %v796_v19 = vpack.c.bf16 %v129_v13, %v128_v12  ;;  %v98_v20 = vld [vmem:[%s1292_s1 + $0x270] sm:$0xff]  ;;  %v99_v22 = vld [vmem:[%s1292_s1 + $0x278] sm:$0xff]  ;;  %v798_v23 = vpack.c.bf16 %v147_v17, %v146_v16 }
  0x2e   :  { %749 = vmatpush3.bf16.msra.mxu0 %v748_v24  ;;  %v130_v24 = vld [vmem:[%s1292_s1 + $0x370] sm:$0xff]  ;;  %v768_v27 = vpack.c.bf16 %v99_v22, %v98_v20 }
  0x2f   :  { %781 = vmatpush3.bf16.msra.mxu1 %v780_v26  ;;  %751 = vmatprep.subr.bf16.mxu0 %v750_v30  ;;  %v131_v26 = vld [vmem:[%s1292_s1 + $0x378] sm:$0xff]  ;;  %v226_v30 = vcombine.low %v209_v59, %v223_v1 }
  0x30   :  { %783 = vmatprep.subr.bf16.mxu1 %v782_v31  ;;  %v800_v28 = vpack.c.bf16 %v131_v26, %v130_v24 }
  0x32   :  { %753 = vmatpush3.bf16.msra.mxu0 %v752_v41 }
  0x33   :  { %785 = vmatpush3.bf16.msra.mxu1 %v784_v42  ;;  %755 = vmatprep.subr.bf16.mxu0 %v754_v47 }
  0x34   :  { %787 = vmatprep.subr.bf16.mxu1 %v786_v48 }
  0x36   :  { %757 = vmatpush3.bf16.msra.mxu0 %v756_v52 }
  0x37   :  { %789 = vmatpush3.bf16.msra.mxu1 %v788_v53  ;;  %759 = vmatprep.subr.bf16.mxu0 %v758_v60 }
  0x38   :  { %791 = vmatprep.subr.bf16.mxu1 %v790_v61 }
  0x3a   :  { %761 = vmatpush3.bf16.msra.mxu0 %v760_v7 }
  0x3b   :  { %793 = vmatpush3.bf16.msra.mxu1 %v792_v8  ;;  %763 = vmatprep.subr.bf16.mxu0 %v762_v10 }
  0x3c   :  { %795 = vmatprep.subr.bf16.mxu1 %v794_v11 }
  0x3e   :  { %765 = vmatpush3.bf16.msra.mxu0 %v764_v18 }
  0x3f   :  { %797 = vmatpush3.bf16.msra.mxu1 %v796_v19  ;;  %767 = vmatprep.subr.bf16.mxu0 %v766_v21 }
  0x40   :  { %799 = vmatprep.subr.bf16.mxu1 %v798_v23 }
  0x42   :  { %769 = vmatpush3.bf16.msra.mxu0 %v768_v27 }
  0x43   :  { %801 = vmatpush3.bf16.msra.mxu1 %v800_v28 }
  0x45   :  { %441 = vmatmul.mubr.f32.vlgmr.msra.gmra.mrb[2].mxu0 %v224_v29 }
  0x46   :  { %511 = vmatmul.mubr.f32.vlgmr.msra.gmra.mrb[2].mxu1 %v226_v30 }
  0xf8   :  { %v566_v31 = vpop.f32.mrb[0].mxu0 }
  0xf9   :  { %v601_v32 = vpop.f32.mrb[0].mxu1  ;;  %v567_v33 = vpop.f32.mrb[1].mxu0 }
  0xfa   :  { %v602_v34 = vpop.f32.mrb[1].mxu1  ;;  %v568_v35 = vadd.f32 %v567_v33, %v566_v31 }
  0xfb   :  { %v603_v36 = vadd.f32 %v602_v34, %v601_v32 }
  0xfd   :  { %v373_v37 = vadd.f32 %v603_v36, %v568_v35 }
 0x118   :  { %v636_v38 = vpop.f32.mrb[2].mxu0 }
 0x119   :  { %v671_v39 = vpop.f32.mrb[2].mxu1  ;;  %v637_v40 = vpop.f32.mrb[3].mxu0 }
 0x11a   :  { %v672_v41 = vpop.f32.mrb[3].mxu1  ;;  %v638_v42 = vadd.f32 %v637_v40, %v636_v38 }
 0x11b   :  { %v673_v43 = vadd.f32 %v672_v41, %v671_v39 }
 0x11c   :  { %v443_v44 = vadd.f32 %v638_v42, %v373_v37 }
 0x11e   :  { %v513_v45 = vadd.f32 %v673_v43, %v443_v44 }
 0x120   :  { %517 = vst.msk [vmem:[#allocation2] sm:$0xff] %vm516_vm0, %v513_v45 }
 0x121   :  { %522 = vsyncadd [#allocation3], 96  ;;  %s843_s1 = smov [#allocation2]  }
 0x122   :  { %s523_s27 = sshll.u32 %s843_s1, 4  ;;  %s524_s27 = int_to_ptr.vmem [resolvable:$true] %s523_s27 }
 0x123   :  { %s818_s28 = scalar_lea.vmem %s524_s27, 32  ;;  %s822_s29 = scalar_lea.vmem %s524_s27, 128 }
 0x124   :  { %p819_p0 = scmp.ne.s32.totalorder %s524_s27, %s818_s28  ;;  %p823_p1 = scmp.lt.s32.totalorder %s524_s27, %s524_s27 }
 0x125   :  { %p824_p2 = scmp.lt.s32.totalorder %s822_s29, %s818_s28 }
 0x127   :  { %p825_p3 = por %p824_p2, %p823_p1 }
 0x129   :  { %p826_p4 = pnand %p825_p3, %p819_p0 }
 0x12b   :  { %829 = shalt.err (!%p826_p4)
}
 0x12c   :  { %s830_s4 = scalar_lea.hbm %s1293_s2, 32 }
 0x12d   :  { %p831_p5 = scmp.ne.s32.totalorder %s1293_s2, %s830_s4  ;;  %p834_p6 = scmp.lt.u32.totalorder %s830_s4, %s1293_s2 }
 0x12f   :  { %p836_p7 = pnand %p834_p6, %p831_p5 }
 0x131   :  { %839 = shalt.err (!%p836_p7)
}
 0x132   :  { %s844_s9 = smov 32   ;;  %s845_s10 = smov 2  }
 0x133   :  { %529 = dma.vmem_to_hbm [thread:$0]  %s524_s27, 32, %s1293_s2, [#allocation3], %s844_s9, %s844_s9, %s845_s10  }
 0x134   :  { %840 = dma.done.wait [#allocation3], 128  }
 0x135   :  { %841 = vsyncadd [#allocation3], 4294967168 }
 0x136   :  { %533 = vsyncpa [#allocation3], 1 }

</bundles_post_ra>
